<compile_context>
chip_gen: v7x
topology: tpu7x:2x2x1
jax: 0.10.0
libtpu: 0.0.40
codegen_flags: <defaults>
</compile_context>

<pallas_src>
import jax
import jax.numpy as jnp
from jax.experimental import pallas as pl
from jax.experimental.pallas import tpu as pltpu


def _round_up(x, m):
    return ((x + m - 1) // m) * m


# --------------------------------------------------------------------------
# Kernel
# --------------------------------------------------------------------------
def _head_kernel(cls_ref, extras_ref,
                 wp_ref, bp_ref,
                 w1h_ref, w1e_ref, b1_ref,
                 w2_ref, b2_ref,
                 w3_ref, b3_ref,
                 o_ref):
    """Pooler + MLP head + softmax for one batch tile.

    cls_ref    : [Bt, H]      bf16 [CLS] hidden state tile
    extras_ref : [Bt, E_pad]  f32 extra features tile (zero-padded)
    wp/bp      : pooler dense (H -> H), tanh
    w1h/w1e/b1 : first MLP linear, split so concat((pooled, extras)) becomes
                 pooled @ W1[:H] + extras @ W1[H:]  (no lane concat)
    w2/b2      : second MLP linear (M_pad -> M_pad)
    w3/b3      : output linear (M_pad -> L_pad); padded label lanes of b3 are
                 pre-set to -1e30 so the softmax zeroes them for free.
    o_ref      : [Bt, L_pad]  softmax probabilities
    """
    # --- BERT pooler: pooled = tanh(cls @ Wp + bp). f32 accumulate, bf16 tanh ---
    pooled = (jnp.dot(cls_ref[...], wp_ref[...],
                      preferred_element_type=jnp.float32) + bp_ref[...])
    pooled = jnp.tanh(pooled.astype(jnp.bfloat16))

    # --- dropout(pooled): identity in eval mode ---

    # --- concat((pooled, extras), dim=1) -> Linear(H+E -> M) -> ReLU ---
    h1 = (jnp.dot(pooled, w1h_ref[...], preferred_element_type=jnp.float32)
          + jnp.dot(extras_ref[...], w1e_ref[...],
                    preferred_element_type=jnp.float32)
          + b1_ref[...])
    h1 = jnp.maximum(h1, 0.0)

    # --- Linear(M -> M) + ReLU ---
    h2 = (jnp.dot(h1.astype(jnp.bfloat16), w2_ref[...],
                  preferred_element_type=jnp.float32) + b2_ref[...])
    h2 = jnp.maximum(h2, 0.0)

    # --- Linear(M -> L); padded label lanes already at -1e30 via b3 ---
    logits = (jnp.dot(h2.astype(jnp.bfloat16), w3_ref[...],
                      preferred_element_type=jnp.float32) + b3_ref[...])

    # --- softmax over the labels axis (dim=1), exact normalization ---
    m = jnp.max(logits, axis=-1, keepdims=True)
    e = jnp.exp(logits - m)
    o_ref[...] = (e / jnp.sum(e, axis=-1, keepdims=True)).astype(o_ref.dtype)


# --------------------------------------------------------------------------
# One-time parameter preprocessing (hoisted out of the forward path)
# --------------------------------------------------------------------------
def prepare_head_params(params, extras_dim):
    """Pad/cast the head weights into kernel layout once (e.g. at load time)."""
    H = params["wp"].shape[0]
    M = params["b1"].shape[-1]
    L = params["b3"].shape[-1]
    E = int(extras_dim)

    E_pad = _round_up(max(E, 1), 16)     # bf16/f32 sublane-friendly
    M_pad = _round_up(M, 128)            # lane-dense
    L_pad = _round_up(L, 128)            # lane-dense output

    f32, bf16 = jnp.float32, jnp.bfloat16

    def pad2(x, rows, cols, dtype):
        buf = jnp.zeros((rows, cols), dtype)
        return buf.at[:x.shape[0], :x.shape[1]].set(x.astype(dtype))

    # Label mask baked into b3: padded lanes get -1e30 (padded W3 columns are
    # zero, so padded logits come out at exactly -1e30 and exp() kills them).
    b3 = jnp.full((1, L_pad), -1e30, f32)
    b3 = b3.at[:, :L].set(params["b3"].astype(f32).reshape(1, L))

    return {
        "H": H, "E": E, "M": M, "L": L,
        "E_pad": E_pad, "M_pad": M_pad, "L_pad": L_pad,
        "wp":  params["wp"].astype(bf16),
        "bp":  params["bp"].astype(f32).reshape(1, H),
        "w1h": pad2(params["w1h"], H, M_pad, bf16),
        "w1e": pad2(params["w1e"], E_pad, M_pad, f32),   # extras path stays f32
        "b1":  pad2(params["b1"].reshape(1, M), 1, M_pad, f32),
        "w2":  pad2(params["w2"], M_pad, M_pad, bf16),
        "b2":  pad2(params["b2"].reshape(1, M), 1, M_pad, f32),
        "w3":  pad2(params["w3"], M_pad, L_pad, bf16),
        "b3":  b3,
    }


# --------------------------------------------------------------------------
# Batch tiling / VMEM sizing heuristics
# --------------------------------------------------------------------------
def _pick_batch_tiling(B):
    """Pick (b_tile, n_tiles) so that
       * padding waste stays small (tiles are multiples of 16 rows, waste
         bounded by ~16 * n_tiles rows, never a round-up to a huge tile),
       * large batches use ~512-row tiles (few grid steps, full MXU rows),
       * there are >= 2 grid steps once there is enough work, so the
         "parallel" batch axis splits across both v7x TensorCores."""
    if B <= 32:
        return _round_up(B, 16), 1
    n_tiles = max(2, pl.cdiv(B, 512))
    b_tile = _round_up(pl.cdiv(B, n_tiles), 16)
    n_tiles = pl.cdiv(B, b_tile)
    return b_tile, n_tiles


def _vmem_limit_bytes(b_tile, H, E_pad, M_pad, L_pad, weight_bytes):
    """Right-sized VMEM limit: weights + double-buffered batch-tile I/O +
    elementwise intermediates, with 2x headroom (clamped to [8, 48] MiB)."""
    tile_io = b_tile * (H * 2 + E_pad * 4 + L_pad * 4)
    interm = b_tile * (H * 6 + M_pad * 12 + L_pad * 8)
    est = 2 * (weight_bytes + tile_io) + interm
    return int(min(48 << 20, max(2 * est, 8 << 20)))


# --------------------------------------------------------------------------
# Head wrapper: one pallas_call, 1-D grid over the batch
# --------------------------------------------------------------------------
def extra_bert_multi_classifier_head(cls_hidden, extras, prepared):
    B = cls_hidden.shape[0]
    H, E, L = prepared["H"], prepared["E"], prepared["L"]
    E_pad, M_pad, L_pad = prepared["E_pad"], prepared["M_pad"], prepared["L_pad"]

    b_tile, n_tiles = _pick_batch_tiling(B)
    B_pad = b_tile * n_tiles

    bf16, f32 = jnp.bfloat16, jnp.float32

    # Per-call activation prep only (weights were prepared once, up front).
    cls_p = cls_hidden.astype(bf16)
    if B_pad != B:
        cls_p = jnp.zeros((B_pad, H), bf16).at[:B].set(cls_p)
    ext_p = jnp.zeros((B_pad, E_pad), f32).at[:B, :E].set(extras.astype(f32))

    def batch_spec(cols):
        return pl.BlockSpec((b_tile, cols), lambda i: (i, 0))

    def resident(rows, cols):
        # Block index never changes -> weight stays resident across the grid.
        return pl.BlockSpec((rows, cols), lambda i: (0, 0))

    weight_keys = ("wp", "bp", "w1h", "w1e", "b1", "w2", "b2", "w3", "b3")
    weight_bytes = sum(int(prepared[k].size) * prepared[k].dtype.itemsize
                       for k in weight_keys)

    flops = 2 * B_pad * (H * H + H * M_pad + E_pad * M_pad
                         + M_pad * M_pad + M_pad * L_pad)
    transcendentals = B_pad * (H + L_pad)
    bytes_accessed = (cls_p.size * 2 + ext_p.size * 4
                      + weight_bytes + B_pad * L_pad * 4)

    out = pl.pallas_call(
        _head_kernel,
        out_shape=jax.ShapeDtypeStruct((B_pad, L_pad), jnp.float32),
        grid=(n_tiles,),
        in_specs=[
            batch_spec(H),              # cls_hidden tile
            batch_spec(E_pad),          # extras tile
            resident(H, H),             # Wp
            resident(1, H),             # bp
            resident(H, M_pad),         # W1 (hidden part)
            resident(E_pad, M_pad),     # W1 (extras part)
            resident(1, M_pad),         # b1
            resident(M_pad, M_pad),     # W2
            resident(1, M_pad),         # b2
            resident(M_pad, L_pad),     # W3
            resident(1, L_pad),         # b3 (label mask baked into padding)
        ],
        out_specs=batch_spec(L_pad),
        compiler_params=pltpu.CompilerParams(
            dimension_semantics=("parallel",),
            vmem_limit_bytes=_vmem_limit_bytes(b_tile, H, E_pad, M_pad, L_pad,
                                               weight_bytes)),
        cost_estimate=pl.CostEstimate(flops=flops,
                                      transcendentals=transcendentals,
                                      bytes_accessed=bytes_accessed),
    )(cls_p, ext_p, prepared["wp"], prepared["bp"],
      prepared["w1h"], prepared["w1e"], prepared["b1"],
      prepared["w2"], prepared["b2"], prepared["w3"], prepared["b3"])

    # Slice padded batch rows / padded label lanes back off.
    return out[:B, :L]


# --------------------------------------------------------------------------
# Parameter construction + BERT encoder stand-in (plain-JAX glue)
# --------------------------------------------------------------------------
def make_params(key, hidden_dim, mlp_dim, extras_dim, labels_count, vocab_size):
    ks = jax.random.split(key, 8)

    def lin(k, fan_in, fan_out):
        scale = 1.0 / jnp.sqrt(jnp.float32(fan_in))
        return jax.random.uniform(k, (fan_in, fan_out), jnp.float32,
                                  -scale, scale)

    w1 = lin(ks[2], hidden_dim + extras_dim, mlp_dim)
    return {
        "emb": jax.random.normal(ks[0], (vocab_size, hidden_dim),
                                 jnp.float32) * 0.02,
        "wp":  lin(ks[1], hidden_dim, hidden_dim),
        "bp":  jnp.zeros((1, hidden_dim), jnp.float32),
        "w1h": w1[:hidden_dim],
        "w1e": w1[hidden_dim:],
        "b1":  jax.random.uniform(ks[3], (1, mlp_dim), jnp.float32, -0.1, 0.1),
        "w2":  lin(ks[4], mlp_dim, mlp_dim),
        "b2":  jax.random.uniform(ks[5], (1, mlp_dim), jnp.float32, -0.1, 0.1),
        "w3":  lin(ks[6], mlp_dim, labels_count),
        "b3":  jax.random.uniform(ks[7], (1, labels_count), jnp.float32,
                                  -0.1, 0.1),
    }


def bert_stand_in_cls(tokens, masks, emb_table):
    """Deterministic stand-in for the BERT encoder's [CLS] final hidden state:
    embedding lookup + attention-mask-weighted mean over the sequence.
    Emits bf16 directly so the head wrapper does no extra f32->bf16 pass."""
    emb = emb_table[tokens]                              # [B, S, H]
    m = masks.astype(jnp.float32)[..., None]             # [B, S, 1]
    denom = jnp.maximum(jnp.sum(m, axis=1), 1.0)         # [B, 1]
    return (jnp.sum(emb * m, axis=1) / denom).astype(jnp.bfloat16)


def forward(tokens, masks, extras, params, prepared=None):
    if prepared is None:
        prepared = prepare_head_params(params, extras.shape[1])
    cls_hidden = bert_stand_in_cls(tokens, masks, params["emb"])
    return extra_bert_multi_classifier_head(cls_hidden, extras, prepared)


if __name__ == "__main__":
    # Small shapes consistent with the module's forward signature.
    B, S = 2, 8                      # batch, sequence length
    hidden_dim = 32                  # (768 in the real module)
    mlp_dim = 16                     # (100 in the real module)
    extras_dim = 6
    labels_count = 4
    vocab_size = 50

    key = jax.random.PRNGKey(0)
    k_tok, k_msk, k_ext, k_par = jax.random.split(key, 4)

    tokens = jax.random.randint(k_tok, (B, S), 0, vocab_size, dtype=jnp.int32)
    masks = (jax.random.uniform(k_msk, (B, S)) > 0.2).astype(jnp.int32)
    extras = jax.random.normal(k_ext, (B, extras_dim), jnp.float32)

    params = make_params(k_par, hidden_dim, mlp_dim, extras_dim,
                         labels_count, vocab_size)
    # Weight padding/casting done once, outside the forward path.
    prepared = prepare_head_params(params, extras_dim)

    proba = forward(tokens, masks, extras, params, prepared)
    proba = jax.block_until_ready(proba)

    # Sanity: rows of a softmax over the real labels sum to 1.
    assert proba.shape == (B, labels_count)
    assert jnp.allclose(jnp.sum(proba, axis=1), 1.0, atol=1e-3)

    print("KERNEL_OK")
</pallas_src>

<mosaic_0001>
module attributes {stable_mosaic.version = 11 : i64} {
  func.func @_head_kernel(%arg0: i32, %arg1: memref<16x32xbf16, #tpu.memory_space<vmem>>, %arg2: memref<16x16xf32, #tpu.memory_space<vmem>>, %arg3: memref<32x32xbf16, #tpu.memory_space<vmem>>, %arg4: memref<1x32xf32, #tpu.memory_space<vmem>>, %arg5: memref<32x128xbf16, #tpu.memory_space<vmem>>, %arg6: memref<16x128xf32, #tpu.memory_space<vmem>>, %arg7: memref<1x128xf32, #tpu.memory_space<vmem>>, %arg8: memref<128x128xbf16, #tpu.memory_space<vmem>>, %arg9: memref<1x128xf32, #tpu.memory_space<vmem>>, %arg10: memref<128x128xbf16, #tpu.memory_space<vmem>>, %arg11: memref<1x128xf32, #tpu.memory_space<vmem>>, %arg12: memref<16x128xf32, #tpu.memory_space<vmem>>) attributes {dimension_semantics = [#tpu.dimension_semantics<parallel>], iteration_bounds = array<i64: 1>, scalar_prefetch = 0 : i64, scratch_operands = 0 : i64, tpu.core_type = #tpu.core_type<tc>, window_params = [{transform_indices = @transform_0, window_bounds = array<i64: 16, 32>}, {transform_indices = @transform_1, window_bounds = array<i64: 16, 16>}, {pipeline_mode = #tpu.pipeline_mode<synchronous>, transform_indices = @transform_2, window_bounds = array<i64: 32, 32>}, {pipeline_mode = #tpu.pipeline_mode<synchronous>, transform_indices = @transform_3, window_bounds = array<i64: 1, 32>}, {pipeline_mode = #tpu.pipeline_mode<synchronous>, transform_indices = @transform_4, window_bounds = array<i64: 32, 128>}, {pipeline_mode = #tpu.pipeline_mode<synchronous>, transform_indices = @transform_5, window_bounds = array<i64: 16, 128>}, {pipeline_mode = #tpu.pipeline_mode<synchronous>, transform_indices = @transform_6, window_bounds = array<i64: 1, 128>}, {pipeline_mode = #tpu.pipeline_mode<synchronous>, transform_indices = @transform_7, window_bounds = array<i64: 128, 128>}, {pipeline_mode = #tpu.pipeline_mode<synchronous>, transform_indices = @transform_8, window_bounds = array<i64: 1, 128>}, {pipeline_mode = #tpu.pipeline_mode<synchronous>, transform_indices = @transform_9, window_bounds = array<i64: 128, 128>}, {pipeline_mode = #tpu.pipeline_mode<synchronous>, transform_indices = @transform_10, window_bounds = array<i64: 1, 128>}, {transform_indices = @transform_11, window_bounds = array<i64: 16, 128>}]} {
    %c0 = arith.constant 0 : index
    %c0_0 = arith.constant 0 : index
    %0 = vector.load %arg1[%c0, %c0_0] : memref<16x32xbf16, #tpu.memory_space<vmem>>, vector<16x32xbf16>
    %c0_1 = arith.constant 0 : index
    %c0_2 = arith.constant 0 : index
    %1 = vector.load %arg3[%c0_1, %c0_2] : memref<32x32xbf16, #tpu.memory_space<vmem>>, vector<32x32xbf16>
    %cst = arith.constant dense<0.000000e+00> : vector<16x32xf32>
    %2 = tpu.matmul %0, %1, %cst {dimension_numbers = #tpu.dot_dimension_numbers<[1], [0], [0], [1], [0, 0, 1, 1], [], []>} : vector<16x32xbf16>, vector<32x32xbf16>, vector<16x32xf32> -> vector<16x32xf32>
    %c0_3 = arith.constant 0 : index
    %c0_4 = arith.constant 0 : index
    %3 = vector.load %arg4[%c0_3, %c0_4] : memref<1x32xf32, #tpu.memory_space<vmem>>, vector<1x32xf32>
    %4 = vector.broadcast %3 : vector<1x32xf32> to vector<16x32xf32>
    %5 = arith.addf %2, %4 : vector<16x32xf32>
    %6 = arith.truncf %5 : vector<16x32xf32> to vector<16x32xbf16>
    %7 = math.tanh %6 : vector<16x32xbf16>
    %c0_5 = arith.constant 0 : index
    %c0_6 = arith.constant 0 : index
    %8 = vector.load %arg5[%c0_5, %c0_6] : memref<32x128xbf16, #tpu.memory_space<vmem>>, vector<32x128xbf16>
    %cst_7 = arith.constant dense<0.000000e+00> : vector<16x128xf32>
    %9 = tpu.matmul %7, %8, %cst_7 {dimension_numbers = #tpu.dot_dimension_numbers<[1], [0], [0], [1], [0, 0, 1, 1], [], []>} : vector<16x32xbf16>, vector<32x128xbf16>, vector<16x128xf32> -> vector<16x128xf32>
    %c0_8 = arith.constant 0 : index
    %c0_9 = arith.constant 0 : index
    %10 = vector.load %arg2[%c0_8, %c0_9] : memref<16x16xf32, #tpu.memory_space<vmem>>, vector<16x16xf32>
    %c0_10 = arith.constant 0 : index
    %c0_11 = arith.constant 0 : index
    %11 = vector.load %arg6[%c0_10, %c0_11] : memref<16x128xf32, #tpu.memory_space<vmem>>, vector<16x128xf32>
    %cst_12 = arith.constant dense<0.000000e+00> : vector<16x128xf32>
    %12 = tpu.matmul %10, %11, %cst_12 {dimension_numbers = #tpu.dot_dimension_numbers<[1], [0], [0], [1], [0, 0, 1, 1], [], []>} : vector<16x16xf32>, vector<16x128xf32>, vector<16x128xf32> -> vector<16x128xf32>
    %13 = arith.addf %9, %12 : vector<16x128xf32>
    %c0_13 = arith.constant 0 : index
    %c0_14 = arith.constant 0 : index
    %14 = vector.load %arg7[%c0_13, %c0_14] : memref<1x128xf32, #tpu.memory_space<vmem>>, vector<1x128xf32>
    %15 = vector.broadcast %14 : vector<1x128xf32> to vector<16x128xf32>
    %16 = arith.addf %13, %15 : vector<16x128xf32>
    %cst_15 = arith.constant 0.000000e+00 : f32
    %17 = vector.broadcast %cst_15 : f32 to vector<16x128xf32>
    %18 = arith.maximumf %16, %17 : vector<16x128xf32>
    %19 = arith.truncf %18 : vector<16x128xf32> to vector<16x128xbf16>
    %c0_16 = arith.constant 0 : index
    %c0_17 = arith.constant 0 : index
    %20 = vector.load %arg8[%c0_16, %c0_17] : memref<128x128xbf16, #tpu.memory_space<vmem>>, vector<128x128xbf16>
    %cst_18 = arith.constant dense<0.000000e+00> : vector<16x128xf32>
    %21 = tpu.matmul %19, %20, %cst_18 {dimension_numbers = #tpu.dot_dimension_numbers<[1], [0], [0], [1], [0, 0, 1, 1], [], []>} : vector<16x128xbf16>, vector<128x128xbf16>, vector<16x128xf32> -> vector<16x128xf32>
    %c0_19 = arith.constant 0 : index
    %c0_20 = arith.constant 0 : index
    %22 = vector.load %arg9[%c0_19, %c0_20] : memref<1x128xf32, #tpu.memory_space<vmem>>, vector<1x128xf32>
    %23 = vector.broadcast %22 : vector<1x128xf32> to vector<16x128xf32>
    %24 = arith.addf %21, %23 : vector<16x128xf32>
    %cst_21 = arith.constant 0.000000e+00 : f32
    %25 = vector.broadcast %cst_21 : f32 to vector<16x128xf32>
    %26 = arith.maximumf %24, %25 : vector<16x128xf32>
    %27 = arith.truncf %26 : vector<16x128xf32> to vector<16x128xbf16>
    %c0_22 = arith.constant 0 : index
    %c0_23 = arith.constant 0 : index
    %28 = vector.load %arg10[%c0_22, %c0_23] : memref<128x128xbf16, #tpu.memory_space<vmem>>, vector<128x128xbf16>
    %cst_24 = arith.constant dense<0.000000e+00> : vector<16x128xf32>
    %29 = tpu.matmul %27, %28, %cst_24 {dimension_numbers = #tpu.dot_dimension_numbers<[1], [0], [0], [1], [0, 0, 1, 1], [], []>} : vector<16x128xbf16>, vector<128x128xbf16>, vector<16x128xf32> -> vector<16x128xf32>
    %c0_25 = arith.constant 0 : index
    %c0_26 = arith.constant 0 : index
    %30 = vector.load %arg11[%c0_25, %c0_26] : memref<1x128xf32, #tpu.memory_space<vmem>>, vector<1x128xf32>
    %31 = vector.broadcast %30 : vector<1x128xf32> to vector<16x128xf32>
    %32 = arith.addf %29, %31 : vector<16x128xf32>
    %cst_27 = arith.constant dense<0xFF800000> : vector<16xf32>
    %33 = vector.multi_reduction <maximumf>, %32, %cst_27 [1] : vector<16x128xf32> to vector<16xf32>
    %34 = vector.shape_cast %33 : vector<16xf32> to vector<16x1xf32>
    %35 = vector.broadcast %34 : vector<16x1xf32> to vector<16x128xf32>
    %36 = arith.subf %32, %35 : vector<16x128xf32>
    %37 = math.exp %36 : vector<16x128xf32>
    %cst_28 = arith.constant dense<0.000000e+00> : vector<16xf32>
    %38 = vector.multi_reduction <add>, %37, %cst_28 [1] : vector<16x128xf32> to vector<16xf32>
    %39 = vector.shape_cast %38 : vector<16xf32> to vector<16x1xf32>
    %40 = vector.broadcast %39 : vector<16x1xf32> to vector<16x128xf32>
    %41 = arith.divf %37, %40 : vector<16x128xf32>
    %c0_29 = arith.constant 0 : index
    %c0_30 = arith.constant 0 : index
    %42 = vector.load %arg12[%c0_29, %c0_30] : memref<16x128xf32, #tpu.memory_space<vmem>>, vector<16x128xf32>
    tpu.vector_store %arg12[%c0_29, %c0_30], %41 {strides = array<i32>} : memref<16x128xf32, #tpu.memory_space<vmem>>, vector<16x128xf32>,
    return
  }
  func.func @transform_0(%arg0: i32) -> (i32, i32) {
    %c0_i32 = arith.constant 0 : i32
    %c0_i32_0 = arith.constant 0 : i32
    return %arg0, %c0_i32 : i32, i32
  }
  func.func @transform_1(%arg0: i32) -> (i32, i32) {
    %c0_i32 = arith.constant 0 : i32
    %c0_i32_0 = arith.constant 0 : i32
    return %arg0, %c0_i32 : i32, i32
  }
  func.func @transform_2(%arg0: i32) -> (i32, i32) {
    %c0_i32 = arith.constant 0 : i32
    %c0_i32_0 = arith.constant 0 : i32
    %c0_i32_1 = arith.constant 0 : i32
    return %c0_i32, %c0_i32_0 : i32, i32
  }
  func.func @transform_3(%arg0: i32) -> (i32, i32) {
    %c0_i32 = arith.constant 0 : i32
    %c0_i32_0 = arith.constant 0 : i32
    %c0_i32_1 = arith.constant 0 : i32
    return %c0_i32, %c0_i32_0 : i32, i32
  }
  func.func @transform_4(%arg0: i32) -> (i32, i32) {
    %c0_i32 = arith.constant 0 : i32
    %c0_i32_0 = arith.constant 0 : i32
    %c0_i32_1 = arith.constant 0 : i32
    return %c0_i32, %c0_i32_0 : i32, i32
  }
  func.func @transform_5(%arg0: i32) -> (i32, i32) {
    %c0_i32 = arith.constant 0 : i32
    %c0_i32_0 = arith.constant 0 : i32
    %c0_i32_1 = arith.constant 0 : i32
    return %c0_i32, %c0_i32_0 : i32, i32
  }
  func.func @transform_6(%arg0: i32) -> (i32, i32) {
    %c0_i32 = arith.constant 0 : i32
    %c0_i32_0 = arith.constant 0 : i32
    %c0_i32_1 = arith.constant 0 : i32
    return %c0_i32, %c0_i32_0 : i32, i32
  }
  func.func @transform_7(%arg0: i32) -> (i32, i32) {
    %c0_i32 = arith.constant 0 : i32
    %c0_i32_0 = arith.constant 0 : i32
    %c0_i32_1 = arith.constant 0 : i32
    return %c0_i32, %c0_i32_0 : i32, i32
  }
  func.func @transform_8(%arg0: i32) -> (i32, i32) {
    %c0_i32 = arith.constant 0 : i32
    %c0_i32_0 = arith.constant 0 : i32
    %c0_i32_1 = arith.constant 0 : i32
    return %c0_i32, %c0_i32_0 : i32, i32
  }
  func.func @transform_9(%arg0: i32) -> (i32, i32) {
    %c0_i32 = arith.constant 0 : i32
    %c0_i32_0 = arith.constant 0 : i32
    %c0_i32_1 = arith.constant 0 : i32
    return %c0_i32, %c0_i32_0 : i32, i32
  }
  func.func @transform_10(%arg0: i32) -> (i32, i32) {
    %c0_i32 = arith.constant 0 : i32
    %c0_i32_0 = arith.constant 0 : i32
    %c0_i32_1 = arith.constant 0 : i32
    return %c0_i32, %c0_i32_0 : i32, i32
  }
  func.func @transform_11(%arg0: i32) -> (i32, i32) {
    %c0_i32 = arith.constant 0 : i32
    %c0_i32_0 = arith.constant 0 : i32
    return %arg0, %c0_i32 : i32, i32
  }
}

</mosaic_0001>

<bundles_post_ra>
// kernel: tpu_custom_call.1
= control target key start
LH: loop header
LB: loop body
LE: loop exit
PB: predicated region body
PF: predicated region fallthrough
CT: control target
= control target key end

     0   :  { %16 = vsyncpa [#allocation3], 0  ;;  %s1182_s0 = inlined_call_operand.hbm [shape: bf16[16,32], index: 0, kind: input, shape index: {}]   ;;  %s1183_s1 = inlined_call_operand.hbm [shape: f32[16,16], index: 1, kind: input, shape index: {}]   ;;  %s1184_s2 = inlined_call_operand.hbm [shape: bf16[32,32], index: 2, kind: input, shape index: {}]   ;;  %s1185_s3 = inlined_call_operand.vmem [shape: f32[1,32], index: 3, kind: input, shape index: {}]   ;;  %s1186_s4 = inlined_call_operand.hbm [shape: bf16[32,128], index: 4, kind: input, shape index: {}]   ;;  %s1187_s5 = inlined_call_operand.vmem [shape: f32[16,128], index: 5, kind: input, shape index: {}]   ;;  %s1188_s6 = inlined_call_operand.vmem [shape: f32[1,128], index: 6, kind: input, shape index: {}]   ;;  %s1189_s7 = inlined_call_operand.hbm [shape: bf16[128,128], index: 7, kind: input, shape index: {}]   ;;  %s1190_s8 = inlined_call_operand.vmem [shape: f32[1,128], index: 8, kind: input, shape index: {}]   ;;  %s1191_s9 = inlined_call_operand.hbm [shape: bf16[128,128], index: 9, kind: input, shape index: {}]   ;;  %s1192_s10 = inlined_call_operand.vmem [shape: f32[1,128], index: 10, kind: input, shape index: {}]   ;;  %s1193_s11 = inlined_call_operand.hbm [shape: f32[16,128], index: 11, kind: output, shape index: {}]  }
   0x1   :  { %17 = vsyncpa [#allocation6], 0 }
   0x2   :  { %18 = vsyncpa [#allocation9], 0 }
   0x3   :  { %19 = vsyncpa [#allocation12], 0 }
   0x4   :  { %20 = vsyncpa [#allocation4], 0  ;;  %s956_s17 = smov [#allocation5]   ;;  %s792_s21 = scalar_lea.hbm %s1183_s1, 256 }
   0x5   :  { %s38_s18 = sshll.u32 %s956_s17, 4  ;;  %p793_p0 = scmp.ne.s32.totalorder %s1183_s1, %s792_s21  ;;  %s39_s18 = int_to_ptr.vmem [resolvable:$true] %s38_s18 }
   0x6   :  { %p796_p1 = scmp.lt.u32.totalorder %s792_s21, %s1183_s1 }
   0x8   :  { %p798_p2 = pnand %p796_p1, %p793_p0 }
   0xa   :  { %801 = shalt.err (!%p798_p2)
}
   0xb   :  { %s802_s26 = scalar_lea.vmem %s39_s18, 256  ;;  %p807_p4 = scmp.lt.s32.totalorder %s39_s18, %s39_s18 }
   0xc   :  { %p803_p3 = scmp.ne.s32.totalorder %s39_s18, %s802_s26  ;;  %p808_p5 = scmp.lt.s32.totalorder %s802_s26, %s802_s26 }
   0xe   :  { %p809_p6 = por %p808_p5, %p807_p4 }
  0x10   :  { %p810_p7 = pnand %p809_p6, %p803_p3 }
  0x12   :  { %813 = shalt.err (!%p810_p7)
}
  0x13   :  { %s957_s27 = smov 128   ;;  %s958_s28 = smov 8  }
  0x14   :  { %44 = dma.hbm_to_vmem [thread:$0]  %s1183_s1, 256, %s39_s18, [#allocation6], %s957_s27, %s957_s27, %s958_s28  }
  0x15   :  { %s959_s12 = smov [#allocation8]   ;;  %s960_s14 = smov [#allocation2]  }
  0x16   :  { %s64_s13 = sshll.u32 %s959_s12, 4  ;;  %s26_s15 = sshll.u32 %s960_s14, 4  ;;  %s65_s13 = int_to_ptr.vmem [resolvable:$true] %s64_s13  ;;  %s27_s15 = int_to_ptr.vmem [resolvable:$true] %s26_s15 }
  0x17   :  { %s814_s19 = scalar_lea.hbm %s1186_s4, 256 }
  0x18   :  { %p815_p8 = scmp.ne.s32.totalorder %s1186_s4, %s814_s19  ;;  %p818_p9 = scmp.lt.u32.totalorder %s814_s19, %s1186_s4 }
  0x1a   :  { %p820_p10 = pnand %p818_p9, %p815_p8 }
  0x1c   :  { %823 = shalt.err (!%p820_p10)
}
  0x1d   :  { %s824_s1 = scalar_lea.vmem %s65_s13, 256  ;;  %p829_p12 = scmp.lt.s32.totalorder %s65_s13, %s65_s13 }
  0x1e   :  { %p825_p11 = scmp.ne.s32.totalorder %s65_s13, %s824_s1  ;;  %p830_p13 = scmp.lt.s32.totalorder %s824_s1, %s824_s1 }
  0x20   :  { %p831_p0 = por %p830_p13, %p829_p12 }
  0x22   :  { %p832_p1 = pnand %p831_p0, %p825_p11 }
  0x24   :  { %835 = shalt.err (!%p832_p1)
}
  0x25   :  { %s961_s18 = smov 64   ;;  %s962_s24 = smov 4  }
  0x26   :  { %70 = dma.hbm_to_vmem [thread:$0]  %s1186_s4, 256, %s65_s13, [#allocation9], %s961_s18, %s961_s18, %s962_s24  }
  0x27   :  { %s836_s12 = scalar_lea.hbm %s1182_s0, 128 }
  0x28   :  { %p837_p2 = scmp.ne.s32.totalorder %s1182_s0, %s836_s12  ;;  %p840_p3 = scmp.lt.u32.totalorder %s836_s12, %s1182_s0 }
  0x2a   :  { %p842_p4 = pnand %p840_p3, %p837_p2 }
  0x2c   :  { %845 = shalt.err (!%p842_p4)
}
  0x2d   :  { %s846_s20 = scalar_lea.vmem %s27_s15, 128  ;;  %p851_p6 = scmp.lt.s32.totalorder %s27_s15, %s27_s15 }
  0x2e   :  { %p847_p5 = scmp.ne.s32.totalorder %s27_s15, %s846_s20  ;;  %p852_p7 = scmp.lt.s32.totalorder %s846_s20, %s846_s20 }
  0x30   :  { %p853_p8 = por %p852_p7, %p851_p6 }
  0x32   :  { %p854_p9 = pnand %p853_p8, %p847_p5 }
  0x34   :  { %857 = shalt.err (!%p854_p9)
}
  0x35   :  { %32 = dma.hbm_to_vmem [thread:$0]  %s1182_s0, 128, %s27_s15, [#allocation3], %s961_s18, %s961_s18, %s962_s24  }
  0x36   :  { %s963_s21 = smov [#allocation7]   ;;  %s964_s23 = smov [#allocation10]  }
  0x37   :  { %s50_s22 = sshll.u32 %s963_s21, 4  ;;  %s80_s1 = sshll.u32 %s964_s23, 4  ;;  %s51_s22 = int_to_ptr.vmem [resolvable:$true] %s50_s22  ;;  %s81_s1 = int_to_ptr.vmem [resolvable:$true] %s80_s1 }
  0x38   :  { %s858_s29 = scalar_lea.hbm %s1184_s2, 256 }
  0x39   :  { %p859_p10 = scmp.ne.s32.totalorder %s1184_s2, %s858_s29  ;;  %p862_p11 = scmp.lt.u32.totalorder %s858_s29, %s1184_s2 }
  0x3b   :  { %p864_p12 = pnand %p862_p11, %p859_p10 }
  0x3d   :  { %867 = shalt.err (!%p864_p12)
}
  0x3e   :  { %s868_s0 = scalar_lea.vmem %s51_s22, 256  ;;  %p873_p0 = scmp.lt.s32.totalorder %s51_s22, %s51_s22 }
  0x3f   :  { %p869_p13 = scmp.ne.s32.totalorder %s51_s22, %s868_s0  ;;  %p874_p1 = scmp.lt.s32.totalorder %s868_s0, %s868_s0 }
  0x41   :  { %p875_p2 = por %p874_p1, %p873_p0 }
  0x43   :  { %p876_p3 = pnand %p875_p2, %p869_p13 }
  0x45   :  { %879 = shalt.err (!%p876_p3)
}
  0x46   :  { %56 = dma.hbm_to_vmem [thread:$0]  %s1184_s2, 256, %s51_s22, [#allocation6], %s961_s18, %s961_s18, %s962_s24  }
  0x47   :  { %s880_s4 = scalar_lea.hbm %s1189_s7, 1024 }
  0x48   :  { %p881_p4 = scmp.ne.s32.totalorder %s1189_s7, %s880_s4  ;;  %p884_p5 = scmp.lt.u32.totalorder %s880_s4, %s1189_s7 }
  0x4a   :  { %p886_p6 = pnand %p884_p5, %p881_p4 }
  0x4c   :  { %889 = shalt.err (!%p886_p6)
}
  0x4d   :  { %s890_s26 = scalar_lea.vmem %s81_s1, 1024  ;;  %p895_p8 = scmp.lt.s32.totalorder %s81_s1, %s81_s1 }
  0x4e   :  { %p891_p7 = scmp.ne.s32.totalorder %s81_s1, %s890_s26  ;;  %p896_p9 = scmp.lt.s32.totalorder %s890_s26, %s890_s26 }
  0x50   :  { %p897_p10 = por %p896_p9, %p895_p8 }
  0x52   :  { %p898_p11 = pnand %p897_p10, %p891_p7 }
  0x54   :  { %901 = shalt.err (!%p898_p11)
}
  0x55   :  { %86 = dma.hbm_to_vmem [thread:$0]  %s1189_s7, 1024, %s81_s1, [#allocation9], %s961_s18, %s961_s18, %s962_s24  }
  0x56   :  { %s965_s29 = smov [#allocation11]   ;;  %s902_s16 = scalar_lea.hbm %s1191_s9, 1024 }
  0x57   :  { %s94_s30 = sshll.u32 %s965_s29, 4  ;;  %p903_p12 = scmp.ne.s32.totalorder %s1191_s9, %s902_s16  ;;  %s95_s30 = int_to_ptr.vmem [resolvable:$true] %s94_s30 }
  0x58   :  { %p906_p13 = scmp.lt.u32.totalorder %s902_s16, %s1191_s9 }
  0x5a   :  { %p908_p0 = pnand %p906_p13, %p903_p12 }
  0x5c   :  { %911 = shalt.err (!%p908_p0)
}
  0x5d   :  { %s912_s20 = scalar_lea.vmem %s95_s30, 1024  ;;  %p917_p2 = scmp.lt.s32.totalorder %s95_s30, %s95_s30 }
  0x5e   :  { %p913_p1 = scmp.ne.s32.totalorder %s95_s30, %s912_s20  ;;  %p918_p3 = scmp.lt.s32.totalorder %s912_s20, %s912_s20 }
  0x60   :  { %p919_p4 = por %p918_p3, %p917_p2 }
  0x62   :  { %p920_p5 = pnand %p919_p4, %p913_p1 }
  0x64   :  { %923 = shalt.err (!%p920_p5)
}
  0x65   :  { %100 = dma.hbm_to_vmem [thread:$0]  %s1191_s9, 1024, %s95_s30, [#allocation12], %s961_s18, %s961_s18, %s962_s24  }
  0x66   :  { %946 = dma.done.wait [#allocation3], 128  }
  0x67   :  { %947 = vsyncadd [#allocation3], 4294967168 }
  0x68   :  { %948 = dma.done.wait [#allocation6], 512  }
  0x69   :  { %949 = vsyncadd [#allocation6], 4294966784 }
  0x6a   :  { %950 = dma.done.wait [#allocation9], 1280  }
  0x6b   :  { %951 = vsyncadd [#allocation9], 4294966016 }
  0x6c   :  { %952 = dma.done.wait [#allocation12], 1024  }
  0x6d   :  { %953 = vsyncadd [#allocation12], 4294966272  ;;  %v966_v0 = vmov 0.0   ;;  %vm967_vm0 = vmmov 0   ;;  %v761_v1 = vld [vmem:[#allocation7] sm:$0xff]   ;;  %v762_v2 = vld [vmem:[#allocation7 + $0x8] sm:$0xff]  }
  0x6e   :  { %681 = vmatprep.subr.bf16.mxu0 %v966_v0  ;;  %685 = vmatprep.mubr.msk.bf16.mxu0 %vm967_vm0, %v966_v0  ;;  %v763_v3 = vld [vmem:[#allocation2] sm:$0xff]   ;;  %vm152_vm1 = vcmask 261120   ;;  %v205_v4 = vld [vmem:[%s1187_s5] sm:$0xff]  ;;  %v206_v5 = vld [vmem:[%s1187_s5 + $0x8] sm:$0xff]  ;;  %vm207_vm2 = vcmask 130048  }
  0x6f   :  { %682 = vmatpush3.bf16.msra.mxu0 %v761_v1  ;;  %v744_v6 = vpack.c.bf16 %v206_v5, %v205_v4  ;;  %v203_v7 = vld [vmem:[#allocation5] sm:$0xff]  ;;  %v204_v8 = vld [vmem:[#allocation5 + $0x8] sm:$0xff]  ;;  %v766_v11 = vld [vmem:[#allocation10] sm:$0xff]  }
  0x70   :  { %683 = vmatprep.subr.bf16.mxu0 %v966_v0  ;;  %693 = vmatprep.mubr.msk.f32.mxu1 %vm207_vm2, %v203_v7  ;;  %v764_v9 = vld [vmem:[#allocation8] sm:$0xff]   ;;  %v765_v10 = vld [vmem:[#allocation8 + $0x8] sm:$0xff]   ;;  %v767_v12 = vld [vmem:[#allocation10 + $0x8] sm:$0xff]  }
  0x71   :  { %745 = vmatprep.subr.bf16.mxu1 %v744_v6  ;;  %v768_v13 = vld [vmem:[#allocation10 + $0x10] sm:$0xff]   ;;  %v769_v14 = vld [vmem:[#allocation10 + $0x18] sm:$0xff]   ;;  %v770_v15 = vld [vmem:[#allocation10 + $0x20] sm:$0xff]  }
  0x72   :  { %747 = vmatpush3.bf16.msra.mxu1 %v744_v6  ;;  %v624_v16 = vld [vmem:[%s1185_s3] ss:$0 sm:$0xff]  ;;  %v771_v27 = vld [vmem:[#allocation10 + $0x28] sm:$0xff]   ;;  %v772_v28 = vld [vmem:[#allocation10 + $0x30] sm:$0xff]  }
  0x73   :  { %684 = vmatpush3.bf16.msra.mxu0 %v762_v2  ;;  %696 = vmatprep.subr.bf16.mxu1 %v966_v0  ;;  %v773_v29 = vld [vmem:[#allocation10 + $0x38] sm:$0xff]   ;;  %v774_v30 = vld [vmem:[#allocation11] sm:$0xff]   ;;  %v775_v31 = vld [vmem:[#allocation11 + $0x8] sm:$0xff]  }
  0x74   :  { %704 = vmatprep.subr.bf16.mxu0 %v966_v0  ;;  %v776_v32 = vld [vmem:[#allocation11 + $0x10] sm:$0xff]   ;;  %v777_v33 = vld [vmem:[#allocation11 + $0x18] sm:$0xff]   ;;  %v778_v34 = vld [vmem:[#allocation11 + $0x20] sm:$0xff]  }
  0x75   :  { %694 = vmatmul.mubr.msk.f32.vlgmr.msra.gmra.mrb[0].mxu1 %vm207_vm2, %v204_v8  ;;  %v779_v35 = vld [vmem:[#allocation11 + $0x28] sm:$0xff]   ;;  %v634_v37 = vld [vmem:[%s1188_s6] ss:$0 sm:$0xff]  ;;  %v780_v48 = vld [vmem:[#allocation11 + $0x30] sm:$0xff]  }
  0x76   :  { %686 = vmatmul.mubr.msk.bf16.vlgmr.msra.gmra.mrb[0].mxu0 %vm152_vm1, %v763_v3  ;;  %697 = vmatpush3.bf16.msra.mxu1 %v764_v9  ;;  %v781_v49 = vld [vmem:[#allocation11 + $0x38] sm:$0xff]  }
  0x77   :  { %720 = vmatprep.mubr.msk.bf16.mxu0 %vm967_vm0, %v966_v0  ;;  %700 = vmatprep.mubr.msk.bf16.mxu1 %vm967_vm0, %v966_v0  ;;  %v635_v50 = vld [vmem:[%s1190_s8] ss:$0 sm:$0xff]  ;;  %s968_s8 = smov [#allocation13]  }
  0x78   :  { %698 = vmatprep.subr.bf16.mxu1 %v966_v0  ;;  %705 = vmatpush3.bf16.msra.mxu0 %v766_v11  ;;  %v644_v60 = vld [vmem:[%s1192_s10] ss:$0 sm:$0xff]  ;;  %s609_s10 = sshll.u32 %s968_s8, 4  ;;  %s610_s10 = int_to_ptr.vmem [resolvable:$true] %s609_s10 }
  0x79   :  { %706 = vmatprep.subr.bf16.mxu0 %v966_v0  ;;  %s924_s2 = scalar_lea.vmem %s610_s10, 256  ;;  %p929_p7 = scmp.lt.s32.totalorder %s610_s10, %s610_s10 }
  0x7a   :  { %699 = vmatpush3.bf16.msra.mxu1 %v765_v10  ;;  %p925_p6 = scmp.ne.s32.totalorder %s610_s10, %s924_s2  ;;  %p930_p8 = scmp.lt.s32.totalorder %s924_s2, %s924_s2 }
  0x7b   :  { %724 = vmatprep.subr.bf16.mxu1 %v966_v0 }
  0x7c   :  { %707 = vmatpush3.bf16.msra.mxu0 %v767_v12  ;;  %p931_p9 = por %p930_p8, %p929_p7 }
  0x7d   :  { %708 = vmatprep.subr.bf16.mxu0 %v966_v0 }
  0x7e   :  { %p932_p10 = pnand %p931_p9, %p925_p6 }
  0x80   :  { %709 = vmatpush3.bf16.msra.mxu0 %v768_v13 }
  0x81   :  { %710 = vmatprep.subr.bf16.mxu0 %v966_v0 }
  0x84   :  { %711 = vmatpush3.bf16.msra.mxu0 %v769_v14 }
  0x85   :  { %712 = vmatprep.subr.bf16.mxu0 %v966_v0 }
  0x88   :  { %713 = vmatpush3.bf16.msra.mxu0 %v770_v15 }
  0x89   :  { %714 = vmatprep.subr.bf16.mxu0 %v966_v0 }
  0x8c   :  { %715 = vmatpush3.bf16.msra.mxu0 %v771_v27 }
  0x8d   :  { %716 = vmatprep.subr.bf16.mxu0 %v966_v0 }
  0x90   :  { %717 = vmatpush3.bf16.msra.mxu0 %v772_v28 }
  0x91   :  { %718 = vmatprep.subr.bf16.mxu0 %v966_v0 }
  0x94   :  { %719 = vmatpush3.bf16.msra.mxu0 %v773_v29 }
 0x148   :  { %v695_v25 = vpop.f32.mrb[0].mxu1 }
 0x149   :  { %v190_v17 = vpop.f32.mrb[0].mxu0  ;;  %v280_v26 = vpop.f32.mrb[1].mxu1 }
 0x14a   :  { %v687_v18 = vpop.f32.mrb[1].mxu0  ;;  %v191_v20 = vadd.f32 %v624_v16, %v190_v17 }
 0x14b   :  { %v193_v19 = vpop.f32.mrb[2].mxu0 }
 0x14c   :  { %v194_v21 = vadd.f32 %v624_v16, %v193_v19  ;;  %v688_v22 = vpop.f32.mrb[3].mxu0 }
 0x14e   :  { %v197_v23 = vpack.c.bf16 %v194_v21, %v191_v20 }
 0x150   :  { %782 = vtanh.bf16 %v197_v23 }
 0x15b   :  { %v783_v24 = vpop.eup %782 }
 0x15c   :  { %701 = vmatmul.mubr.msk.bf16.vlgmr.msra.gmra.mrb[4].mxu1 %vm152_vm1, %v783_v24 }
 0x15d   :  { %740 = vmatprep.mubr.msk.bf16.mxu1 %vm967_vm0, %v966_v0  ;;  %725 = vmatpush3.bf16.msra.mxu1 %v774_v30 }
 0x15e   :  { %726 = vmatprep.subr.bf16.mxu1 %v966_v0 }
 0x161   :  { %727 = vmatpush3.bf16.msra.mxu1 %v775_v31 }
 0x162   :  { %728 = vmatprep.subr.bf16.mxu1 %v966_v0 }
 0x165   :  { %729 = vmatpush3.bf16.msra.mxu1 %v776_v32 }
 0x166   :  { %730 = vmatprep.subr.bf16.mxu1 %v966_v0 }
 0x169   :  { %731 = vmatpush3.bf16.msra.mxu1 %v777_v33 }
 0x16a   :  { %732 = vmatprep.subr.bf16.mxu1 %v966_v0 }
 0x16d   :  { %733 = vmatpush3.bf16.msra.mxu1 %v778_v34 }
 0x16e   :  { %734 = vmatprep.subr.bf16.mxu1 %v966_v0 }
 0x171   :  { %735 = vmatpush3.bf16.msra.mxu1 %v779_v35 }
 0x172   :  { %736 = vmatprep.subr.bf16.mxu1 %v966_v0 }
 0x175   :  { %737 = vmatpush3.bf16.msra.mxu1 %v780_v48 }
 0x176   :  { %738 = vmatprep.subr.bf16.mxu1 %v966_v0 }
 0x179   :  { %739 = vmatpush3.bf16.msra.mxu1 %v781_v49 }
 0x22f   :  { %v338_v36 = vpop.f32.mrb[4].mxu1 }
 0x230   :  { %v339_v38 = vadd.f32 %v338_v36, %v280_v26  ;;  %v702_v39 = vpop.f32.mrb[5].mxu1 }
 0x231   :  { %v341_v40 = vpop.f32.mrb[6].mxu1 }
 0x232   :  { %v352_v41 = vadd.f32 %v634_v37, %v339_v38  ;;  %v342_v42 = vadd.f32 %v695_v25, %v341_v40  ;;  %v703_v43 = vpop.f32.mrb[7].mxu1 }
 0x234   :  { %v353_v44 = vadd.f32 %v634_v37, %v342_v42  ;;  %v354_v45 = vmax.f32 %v352_v41, 0.0 }
 0x236   :  { %v355_v46 = vmax.f32 %v353_v44, 0.0 }
 0x238   :  { %v356_v47 = vpack.c.bf16 %v355_v46, %v354_v45 }
 0x23a   :  { %721 = vmatmul.mubr.bf16.vlgmr.msra.gmra.mrb[4].mxu0 %v356_v47 }
 0x30d   :  { %v462_v51 = vpop.f32.mrb[4].mxu0 }
 0x30e   :  { %v463_v52 = vadd.f32 %v635_v50, %v462_v51  ;;  %v722_v53 = vpop.f32.mrb[5].mxu0 }
 0x30f   :  { %v465_v54 = vpop.f32.mrb[6].mxu0 }
 0x310   :  { %v466_v55 = vadd.f32 %v635_v50, %v465_v54  ;;  %v723_v56 = vpop.f32.mrb[7].mxu0  ;;  %v469_v57 = vmax.f32 %v463_v52, 0.0 }
 0x312   :  { %v470_v58 = vmax.f32 %v466_v55, 0.0 }
 0x314   :  { %v471_v59 = vpack.c.bf16 %v470_v58, %v469_v57 }
 0x316   :  { %741 = vmatmul.mubr.bf16.vlgmr.msra.gmra.mrb[8].mxu1 %v471_v59 }
 0x3e9   :  { %v577_v61 = vpop.f32.mrb[8].mxu1 }
 0x3ea   :  { %v578_v62 = vadd.f32 %v644_v60, %v577_v61  ;;  %v742_v63 = vpop.f32.mrb[9].mxu1 }
 0x3eb   :  { %v580_v0 = vpop.f32.mrb[10].mxu1 }
 0x3ec   :  { %584 = vmax.xlane.f32.xlu0 %v578_v62  ;;  %v743_v1 = vpop.f32.mrb[11].mxu1  ;;  %v581_v2 = vadd.f32 %v644_v60, %v580_v0 }
 0x3f0   :  { %586 = vmax.xlane.f32.xlu0 %v581_v2 }
 0x479   :  { %v585_v3 = vpop.xlane.xlu0 %584 }
 0x47a   :  { %v588_v4 = vsub.f32 %v578_v62, %v585_v3 }
 0x47c   :  { %v590_v5 = vmul.f32 1.442695, %v588_v4 }
 0x47d   :  { %v587_v6 = vpop.xlane.xlu0 %586 }
 0x47e   :  { %784 = vpow2.f32 %v590_v5  ;;  %v589_v7 = vsub.f32 %v581_v2, %v587_v6 }
 0x480   :  { %v592_v8 = vmul.f32 1.442695, %v589_v7 }
 0x482   :  { %786 = vpow2.f32 %v592_v8 }
 0x488   :  { %v785_v9 = vpop.eup %784 }
 0x489   :  { %594 = vadd.xlane.f32.xlu1 %v785_v9 }
 0x48c   :  { %v787_v10 = vpop.eup %786 }
 0x48d   :  { %596 = vadd.xlane.f32.xlu1 %v787_v10 }
 0x516   :  { %v595_v11 = vpop.xlane.xlu1 %594 }
 0x517   :  { %788 = vrcp.f32 %v595_v11 }
 0x51a   :  { %v597_v12 = vpop.xlane.xlu1 %596 }
 0x51b   :  { %790 = vrcp.f32 %v597_v12 }
 0x521   :  { %v789_v13 = vpop.eup %788 }
 0x522   :  { %v599_v14 = vmul.f32 %v789_v13, %v785_v9 }
 0x524   :  { %602 = vst [vmem:[#allocation13] sm:$0xff] %v599_v14 }
 0x525   :  { %v791_v15 = vpop.eup %790 }
 0x526   :  { %v601_v16 = vmul.f32 %v791_v15, %v787_v10 }
 0x528   :  { %603 = vst [vmem:[#allocation13 + $0x8] sm:$0xff] %v601_v16 }
 0x529   :  { %935 = shalt.err (!%p932_p10)
}
 0x52a   :  { %s936_s30 = scalar_lea.hbm %s1193_s11, 256 }
 0x52b   :  { %p937_p11 = scmp.ne.s32.totalorder %s1193_s11, %s936_s30  ;;  %p940_p12 = scmp.lt.u32.totalorder %s936_s30, %s1193_s11 }
 0x52d   :  { %p942_p13 = pnand %p940_p12, %p937_p11 }
 0x52f   :  { %945 = shalt.err (!%p942_p13)
}
 0x530   :  { %615 = dma.vmem_to_hbm [thread:$0]  %s610_s10, 256, %s1193_s11, [#allocation4], %s957_s27, %s957_s27, %s958_s28  }
 0x531   :  { %954 = dma.done.wait [#allocation4], 256  }
 0x532   :  { %955 = vsyncadd [#allocation4], 4294967040 }
 0x533   :  { %619 = vsyncpa [#allocation3], 1 }
 0x534   :  { %620 = vsyncpa [#allocation6], 1 }
 0x535   :  { %621 = vsyncpa [#allocation9], 1 }
 0x536   :  { %622 = vsyncpa [#allocation12], 1 }
 0x537   :  { %623 = vsyncpa [#allocation4], 1 }

</bundles_post_ra>
